<compile_context>
chip_gen: v6e
topology: v6e:2x2x1
jax: 0.10.0
libtpu: 0.0.40
codegen_flags: <defaults>
</compile_context>

<pallas_src>
import jax
import jax.numpy as jnp
from jax.experimental import pallas as pl
from jax.experimental.pallas import tpu as pltpu

LN_EPS = 1e-5      # torch.nn.LayerNorm default
NEG_BIG = -1e30    # bias for padded softmax columns -> exp underflows to exactly 0
LANE = 128


def _layernorm(x, gamma, beta):
    mean = jnp.mean(x, axis=-1, keepdims=True)
    var = jnp.mean((x - mean) ** 2, axis=-1, keepdims=True)
    return (x - mean) * jax.lax.rsqrt(var + LN_EPS) * gamma + beta


def attention_fusion_kernel(
    x_ref,        # [tb, D_pad]   concat(e0,e1,e2, 1, 0...)
    wblk_ref,     # [D_pad, 3H]   block-diag projection weights (+ bias row)
    wa1_ref,      # [3H, H]       attention Linear(3H -> H)
    rows_ref,     # [8, H]        packed rows: ba1, ga, bea, bf, gf, bef, 0, 0
    wa2_ref,      # [H, 128]      attention Linear(H -> 3), zero-padded to 128 lanes
    ba2_ref,      # [1, 128]      its bias, padded columns = -1e30
    wf_ref,       # [H, H]        final Linear(H -> H)
    fused_ref,    # [tb, H]
    attn_ref,     # [tb, 128]     lane-dense attention weights (first 3 cols real)
):
    f32 = jnp.float32
    H = wa1_ref.shape[1]

    # --- all modality projections in one MXU push (biases folded via ones column) ---
    p_cat = jnp.dot(x_ref[...], wblk_ref[...], preferred_element_type=f32)  # [tb, 3H]

    rows = rows_ref[...].astype(f32)
    ba1, ga, bea = rows[0:1, :], rows[1:2, :], rows[2:3, :]
    bf, gf, bef = rows[3:4, :], rows[4:5, :], rows[5:6, :]

    # --- attention MLP on the concatenated projections: single [3H, H] matmul ---
    h = jnp.dot(p_cat, wa1_ref[...], preferred_element_type=f32) + ba1
    h = jnp.maximum(_layernorm(h, ga, bea), 0.0)

    # --- softmax over modalities in a lane-dense 128-wide buffer ---
    # Padded columns: weight 0, bias -1e30 -> exp == 0 exactly, so the softmax over
    # the first 3 columns is numerically identical to a 3-wide softmax.
    logits = jnp.dot(h, wa2_ref[...], preferred_element_type=f32) + ba2_ref[...]
    m = jnp.max(logits, axis=-1, keepdims=True)
    ex = jnp.exp(logits - m)
    attn = ex * pl.reciprocal(jnp.sum(ex, axis=-1, keepdims=True))  # [tb, 128]

    # --- weighted fusion of the projected modalities ---
    p0, p1, p2 = p_cat[:, 0:H], p_cat[:, H:2 * H], p_cat[:, 2 * H:3 * H]
    fused = attn[:, 0:1] * p0 + attn[:, 1:2] * p1 + attn[:, 2:3] * p2

    # --- final projection: Linear -> LayerNorm -> ReLU (-> Dropout) ---
    f = jnp.dot(fused, wf_ref[...], preferred_element_type=f32) + bf
    f = jnp.maximum(_layernorm(f, gf, bef), 0.0)
    # TODO(synk): nn.Dropout is identity in eval mode; training-mode dropout not implemented.

    fused_ref[...] = f.astype(fused_ref.dtype)
    attn_ref[...] = attn.astype(attn_ref.dtype)


def _pick_tb(B):
    """Largest MXU-row-friendly tile that divides B (>= 2 grid steps per core for big B)."""
    for cand in (512, 256, 128, 64, 32, 16, 8):
        if B % cand == 0:
            return min(cand, B)
    return B


def attention_fusion(embs, params, *, tb=None, matmul_dtype=jnp.float32):
    """embs: tuple of 3 arrays [B, D_i]; params: dict of weights. Returns (fused, attn)."""
    e0, e1, e2 = embs
    B = e0.shape[0]
    H = params["w0"].shape[1]
    M = 3
    D0, D1, D2 = e0.shape[1], e1.shape[1], e2.shape[1]
    D_total = D0 + D1 + D2
    D_pad = ((D_total + 1 + LANE - 1) // LANE) * LANE  # +1 for the bias ones-column

    if tb is None:
        tb = _pick_tb(B)
    assert B % tb == 0

    # ---- pack inputs & parameters once, outside the kernel ----
    x_cat = jnp.concatenate([e0, e1, e2, jnp.ones((B, 1), jnp.float32)], axis=-1)
    x_cat = jnp.pad(x_cat, ((0, 0), (0, D_pad - (D_total + 1))))

    wblk = jnp.zeros((D_pad, M * H), jnp.float32)
    wblk = wblk.at[0:D0, 0:H].set(params["w0"])
    wblk = wblk.at[D0:D0 + D1, H:2 * H].set(params["w1"])
    wblk = wblk.at[D0 + D1:D_total, 2 * H:3 * H].set(params["w2"])
    wblk = wblk.at[D_total, :].set(
        jnp.concatenate([params["b0"][0], params["b1"][0], params["b2"][0]]))

    rows = jnp.zeros((8, H), jnp.float32)
    rows = rows.at[0].set(params["ba1"][0])
    rows = rows.at[1].set(params["ga"][0])
    rows = rows.at[2].set(params["bea"][0])
    rows = rows.at[3].set(params["bf"][0])
    rows = rows.at[4].set(params["gf"][0])
    rows = rows.at[5].set(params["bef"][0])

    wa2_pad = jnp.zeros((H, LANE), jnp.float32).at[:, :M].set(params["wa2"])
    ba2_pad = jnp.full((1, LANE), NEG_BIG, jnp.float32).at[0, :M].set(params["ba2"][0])

    wa1 = params["wa1"]
    wf = params["wf"]

    # Optionally run matmul operands in bf16 (v6e/v7x: halves DMA bytes, native MXU
    # rate); LayerNorm/softmax and bias rows stay f32 inside the kernel.
    x_cat, wblk, wa1, wa2_pad, wf = (
        a.astype(matmul_dtype) for a in (x_cat, wblk, wa1, wa2_pad, wf))

    def batch_spec(feat):
        return pl.BlockSpec((tb, feat), lambda i: (i, 0))

    def full_spec(arr):
        return pl.BlockSpec(arr.shape, lambda i: (0, 0))

    param_args = [wblk, wa1, rows, wa2_pad, ba2_pad, wf]

    fused, attn_pad = pl.pallas_call(
        attention_fusion_kernel,
        grid=(B // tb,),
        in_specs=[batch_spec(D_pad)] + [full_spec(p) for p in param_args],
        out_specs=[pl.BlockSpec((tb, H), lambda i: (i, 0)),
                   pl.BlockSpec((tb, LANE), lambda i: (i, 0))],
        out_shape=(jax.ShapeDtypeStruct((B, H), jnp.float32),
                   jax.ShapeDtypeStruct((B, LANE), jnp.float32)),
        compiler_params=pltpu.CompilerParams(
            dimension_semantics=("parallel",)),
        # NOTE: at H=32 everything is tiny; if H is scaled up (wa1 is [3H, H]),
        # re-derive the VMEM budget (v7x has 64 MiB) and set vmem_limit_bytes /
        # tile the 3H dimension.
    )(x_cat, *param_args)

    return fused, attn_pad[:, :M]


def reference(embs, params):
    """Pure-JAX reference mirroring the PyTorch forward (eval mode)."""
    e0, e1, e2 = embs
    p0 = e0 @ params["w0"] + params["b0"]
    p1 = e1 @ params["w1"] + params["b1"]
    p2 = e2 @ params["w2"] + params["b2"]
    concat = jnp.concatenate([p0, p1, p2], axis=-1)

    def ln(x, g, b):
        mu = x.mean(-1, keepdims=True)
        var = ((x - mu) ** 2).mean(-1, keepdims=True)
        return (x - mu) / jnp.sqrt(var + LN_EPS) * g + b

    h = concat @ params["wa1"] + params["ba1"]
    h = jnp.maximum(ln(h, params["ga"], params["bea"]), 0.0)
    attn = jax.nn.softmax(h @ params["wa2"] + params["ba2"], axis=-1)
    fused = attn[:, 0:1] * p0 + attn[:, 1:2] * p1 + attn[:, 2:3] * p2
    f = fused @ params["wf"] + params["bf"]
    f = jnp.maximum(ln(f, params["gf"], params["bef"]), 0.0)
    return f, attn


if __name__ == "__main__":
    key = jax.random.PRNGKey(0)
    input_dims = {"audio": 12, "video": 20, "text": 28}   # 3 modalities
    H = 32
    M = len(input_dims)
    B = 16

    ks = iter(jax.random.split(key, 32))

    def w(shape, scale=0.2):
        return (scale * jax.random.normal(next(ks), shape)).astype(jnp.float32)

    params = {
        # per-modality projections (Linear(D_i -> H)), weights as [in, out]
        "w0": w((input_dims["audio"], H)), "b0": w((1, H)),
        "w1": w((input_dims["video"], H)), "b1": w((1, H)),
        "w2": w((input_dims["text"], H)),  "b2": w((1, H)),
        # attention: Linear(M*H -> H), LayerNorm(H), Linear(H -> M)
        "wa1": w((M * H, H)), "ba1": w((1, H)),
        "ga": jnp.ones((1, H), jnp.float32), "bea": jnp.zeros((1, H), jnp.float32),
        "wa2": w((H, M)), "ba2": w((1, M)),
        # final projection: Linear(H -> H), LayerNorm(H)
        "wf": w((H, H)), "bf": w((1, H)),
        "gf": jnp.ones((1, H), jnp.float32), "bef": jnp.zeros((1, H), jnp.float32),
    }

    embs = (w((B, input_dims["audio"]), 1.0),
            w((B, input_dims["video"]), 1.0),
            w((B, input_dims["text"]), 1.0))

    fused, attn = attention_fusion(embs, params)   # tb defaults to B=16 -> grid of 1
    fused = jax.block_until_ready(fused)
    attn = jax.block_until_ready(attn)

    fused_ref, attn_ref = reference(embs, params)
    assert fused.shape == (B, H) and attn.shape == (B, M)
    assert jnp.allclose(fused, fused_ref, atol=1e-5, rtol=1e-5)
    assert jnp.allclose(attn, attn_ref, atol=1e-5, rtol=1e-5)
    assert jnp.allclose(attn.sum(-1), 1.0, atol=1e-5)

    print("KERNEL_OK")
</pallas_src>

<mosaic_0001>
module attributes {stable_mosaic.version = 11 : i64} {
  func.func @attention_fusion_kernel(%arg0: i32, %arg1: memref<16x128xf32, #tpu.memory_space<vmem>>, %arg2: memref<128x96xf32, #tpu.memory_space<vmem>>, %arg3: memref<96x32xf32, #tpu.memory_space<vmem>>, %arg4: memref<8x32xf32, #tpu.memory_space<vmem>>, %arg5: memref<32x128xf32, #tpu.memory_space<vmem>>, %arg6: memref<1x128xf32, #tpu.memory_space<vmem>>, %arg7: memref<32x32xf32, #tpu.memory_space<vmem>>, %arg8: memref<16x32xf32, #tpu.memory_space<vmem>>, %arg9: memref<16x128xf32, #tpu.memory_space<vmem>>) attributes {dimension_semantics = [#tpu.dimension_semantics<parallel>], iteration_bounds = array<i64: 1>, scalar_prefetch = 0 : i64, scratch_operands = 0 : i64, tpu.core_type = #tpu.core_type<tc>, window_params = [{transform_indices = @transform_0, window_bounds = array<i64: 16, 128>}, {pipeline_mode = #tpu.pipeline_mode<synchronous>, transform_indices = @transform_1, window_bounds = array<i64: 128, 96>}, {pipeline_mode = #tpu.pipeline_mode<synchronous>, transform_indices = @transform_2, window_bounds = array<i64: 96, 32>}, {pipeline_mode = #tpu.pipeline_mode<synchronous>, transform_indices = @transform_3, window_bounds = array<i64: 8, 32>}, {pipeline_mode = #tpu.pipeline_mode<synchronous>, transform_indices = @transform_4, window_bounds = array<i64: 32, 128>}, {pipeline_mode = #tpu.pipeline_mode<synchronous>, transform_indices = @transform_5, window_bounds = array<i64: 1, 128>}, {pipeline_mode = #tpu.pipeline_mode<synchronous>, transform_indices = @transform_6, window_bounds = array<i64: 32, 32>}, {transform_indices = @transform_7, window_bounds = array<i64: 16, 32>}, {transform_indices = @transform_8, window_bounds = array<i64: 16, 128>}]} {
    %c0 = arith.constant 0 : index
    %c0_0 = arith.constant 0 : index
    %0 = vector.load %arg1[%c0, %c0_0] : memref<16x128xf32, #tpu.memory_space<vmem>>, vector<16x128xf32>
    %c0_1 = arith.constant 0 : index
    %c0_2 = arith.constant 0 : index
    %1 = vector.load %arg2[%c0_1, %c0_2] : memref<128x96xf32, #tpu.memory_space<vmem>>, vector<128x96xf32>
    %cst = arith.constant dense<0.000000e+00> : vector<16x96xf32>
    %2 = tpu.matmul %0, %1, %cst {dimension_numbers = #tpu.dot_dimension_numbers<[1], [0], [0], [1], [0, 0, 1, 1], [], []>} : vector<16x128xf32>, vector<128x96xf32>, vector<16x96xf32> -> vector<16x96xf32>
    %c0_3 = arith.constant 0 : index
    %c0_4 = arith.constant 0 : index
    %3 = vector.load %arg4[%c0_3, %c0_4] : memref<8x32xf32, #tpu.memory_space<vmem>>, vector<8x32xf32>
    %4 = vector.extract_strided_slice %3 {offsets = [0, 0], sizes = [1, 32], strides = [1, 1]} : vector<8x32xf32> to vector<1x32xf32>
    %5 = vector.extract_strided_slice %3 {offsets = [1, 0], sizes = [1, 32], strides = [1, 1]} : vector<8x32xf32> to vector<1x32xf32>
    %6 = vector.extract_strided_slice %3 {offsets = [2, 0], sizes = [1, 32], strides = [1, 1]} : vector<8x32xf32> to vector<1x32xf32>
    %7 = vector.extract_strided_slice %3 {offsets = [3, 0], sizes = [1, 32], strides = [1, 1]} : vector<8x32xf32> to vector<1x32xf32>
    %8 = vector.extract_strided_slice %3 {offsets = [4, 0], sizes = [1, 32], strides = [1, 1]} : vector<8x32xf32> to vector<1x32xf32>
    %9 = vector.extract_strided_slice %3 {offsets = [5, 0], sizes = [1, 32], strides = [1, 1]} : vector<8x32xf32> to vector<1x32xf32>
    %c0_5 = arith.constant 0 : index
    %c0_6 = arith.constant 0 : index
    %10 = vector.load %arg3[%c0_5, %c0_6] : memref<96x32xf32, #tpu.memory_space<vmem>>, vector<96x32xf32>
    %cst_7 = arith.constant dense<0.000000e+00> : vector<16x32xf32>
    %11 = tpu.matmul %2, %10, %cst_7 {dimension_numbers = #tpu.dot_dimension_numbers<[1], [0], [0], [1], [0, 0, 1, 1], [], []>} : vector<16x96xf32>, vector<96x32xf32>, vector<16x32xf32> -> vector<16x32xf32>
    %12 = vector.broadcast %4 : vector<1x32xf32> to vector<16x32xf32>
    %13 = arith.addf %11, %12 : vector<16x32xf32>
    %cst_8 = arith.constant dense<0.000000e+00> : vector<16xf32>
    %14 = vector.multi_reduction <add>, %13, %cst_8 [1] : vector<16x32xf32> to vector<16xf32>
    %15 = vector.shape_cast %14 : vector<16xf32> to vector<16x1xf32>
    %cst_9 = arith.constant 3.200000e+01 : f32
    %16 = vector.broadcast %cst_9 : f32 to vector<16x1xf32>
    %17 = arith.divf %15, %16 : vector<16x1xf32>
    %18 = vector.broadcast %17 : vector<16x1xf32> to vector<16x32xf32>
    %19 = arith.subf %13, %18 : vector<16x32xf32>
    %20 = arith.mulf %19, %19 : vector<16x32xf32>
    %cst_10 = arith.constant dense<0.000000e+00> : vector<16xf32>
    %21 = vector.multi_reduction <add>, %20, %cst_10 [1] : vector<16x32xf32> to vector<16xf32>
    %22 = vector.shape_cast %21 : vector<16xf32> to vector<16x1xf32>
    %cst_11 = arith.constant 3.200000e+01 : f32
    %23 = vector.broadcast %cst_11 : f32 to vector<16x1xf32>
    %24 = arith.divf %22, %23 : vector<16x1xf32>
    %25 = vector.broadcast %17 : vector<16x1xf32> to vector<16x32xf32>
    %26 = arith.subf %13, %25 : vector<16x32xf32>
    %cst_12 = arith.constant 9.99999974E-6 : f32
    %27 = vector.broadcast %cst_12 : f32 to vector<16x1xf32>
    %28 = arith.addf %24, %27 : vector<16x1xf32>
    %29 = math.rsqrt %28 : vector<16x1xf32>
    %30 = vector.broadcast %29 : vector<16x1xf32> to vector<16x32xf32>
    %31 = arith.mulf %26, %30 : vector<16x32xf32>
    %32 = vector.broadcast %5 : vector<1x32xf32> to vector<16x32xf32>
    %33 = arith.mulf %31, %32 : vector<16x32xf32>
    %34 = vector.broadcast %6 : vector<1x32xf32> to vector<16x32xf32>
    %35 = arith.addf %33, %34 : vector<16x32xf32>
    %cst_13 = arith.constant 0.000000e+00 : f32
    %36 = vector.broadcast %cst_13 : f32 to vector<16x32xf32>
    %37 = arith.maximumf %35, %36 : vector<16x32xf32>
    %c0_14 = arith.constant 0 : index
    %c0_15 = arith.constant 0 : index
    %38 = vector.load %arg5[%c0_14, %c0_15] : memref<32x128xf32, #tpu.memory_space<vmem>>, vector<32x128xf32>
    %cst_16 = arith.constant dense<0.000000e+00> : vector<16x128xf32>
    %39 = tpu.matmul %37, %38, %cst_16 {dimension_numbers = #tpu.dot_dimension_numbers<[1], [0], [0], [1], [0, 0, 1, 1], [], []>} : vector<16x32xf32>, vector<32x128xf32>, vector<16x128xf32> -> vector<16x128xf32>
    %c0_17 = arith.constant 0 : index
    %c0_18 = arith.constant 0 : index
    %40 = vector.load %arg6[%c0_17, %c0_18] : memref<1x128xf32, #tpu.memory_space<vmem>>, vector<1x128xf32>
    %41 = vector.broadcast %40 : vector<1x128xf32> to vector<16x128xf32>
    %42 = arith.addf %39, %41 : vector<16x128xf32>
    %cst_19 = arith.constant dense<0xFF800000> : vector<16xf32>
    %43 = vector.multi_reduction <maximumf>, %42, %cst_19 [1] : vector<16x128xf32> to vector<16xf32>
    %44 = vector.shape_cast %43 : vector<16xf32> to vector<16x1xf32>
    %45 = vector.broadcast %44 : vector<16x1xf32> to vector<16x128xf32>
    %46 = arith.subf %42, %45 : vector<16x128xf32>
    %47 = math.exp %46 : vector<16x128xf32>
    %cst_20 = arith.constant dense<0.000000e+00> : vector<16xf32>
    %48 = vector.multi_reduction <add>, %47, %cst_20 [1] : vector<16x128xf32> to vector<16xf32>
    %49 = vector.shape_cast %48 : vector<16xf32> to vector<16x1xf32>
    %50 = tpu.reciprocal %49 : vector<16x1xf32> -> vector<16x1xf32>
    %51 = vector.broadcast %50 : vector<16x1xf32> to vector<16x128xf32>
    %52 = arith.mulf %47, %51 : vector<16x128xf32>
    %53 = vector.extract_strided_slice %2 {offsets = [0, 0], sizes = [16, 32], strides = [1, 1]} : vector<16x96xf32> to vector<16x32xf32>
    %54 = vector.extract_strided_slice %2 {offsets = [0, 32], sizes = [16, 32], strides = [1, 1]} : vector<16x96xf32> to vector<16x32xf32>
    %55 = vector.extract_strided_slice %2 {offsets = [0, 64], sizes = [16, 32], strides = [1, 1]} : vector<16x96xf32> to vector<16x32xf32>
    %56 = vector.extract_strided_slice %52 {offsets = [0, 0], sizes = [16, 1], strides = [1, 1]} : vector<16x128xf32> to vector<16x1xf32>
    %57 = vector.broadcast %56 : vector<16x1xf32> to vector<16x32xf32>
    %58 = arith.mulf %57, %53 : vector<16x32xf32>
    %59 = vector.extract_strided_slice %52 {offsets = [0, 1], sizes = [16, 1], strides = [1, 1]} : vector<16x128xf32> to vector<16x1xf32>
    %60 = vector.broadcast %59 : vector<16x1xf32> to vector<16x32xf32>
    %61 = arith.mulf %60, %54 : vector<16x32xf32>
    %62 = arith.addf %58, %61 : vector<16x32xf32>
    %63 = vector.extract_strided_slice %52 {offsets = [0, 2], sizes = [16, 1], strides = [1, 1]} : vector<16x128xf32> to vector<16x1xf32>
    %64 = vector.broadcast %63 : vector<16x1xf32> to vector<16x32xf32>
    %65 = arith.mulf %64, %55 : vector<16x32xf32>
    %66 = arith.addf %62, %65 : vector<16x32xf32>
    %c0_21 = arith.constant 0 : index
    %c0_22 = arith.constant 0 : index
    %67 = vector.load %arg7[%c0_21, %c0_22] : memref<32x32xf32, #tpu.memory_space<vmem>>, vector<32x32xf32>
    %cst_23 = arith.constant dense<0.000000e+00> : vector<16x32xf32>
    %68 = tpu.matmul %66, %67, %cst_23 {dimension_numbers = #tpu.dot_dimension_numbers<[1], [0], [0], [1], [0, 0, 1, 1], [], []>} : vector<16x32xf32>, vector<32x32xf32>, vector<16x32xf32> -> vector<16x32xf32>
    %69 = vector.broadcast %7 : vector<1x32xf32> to vector<16x32xf32>
    %70 = arith.addf %68, %69 : vector<16x32xf32>
    %cst_24 = arith.constant dense<0.000000e+00> : vector<16xf32>
    %71 = vector.multi_reduction <add>, %70, %cst_24 [1] : vector<16x32xf32> to vector<16xf32>
    %72 = vector.shape_cast %71 : vector<16xf32> to vector<16x1xf32>
    %cst_25 = arith.constant 3.200000e+01 : f32
    %73 = vector.broadcast %cst_25 : f32 to vector<16x1xf32>
    %74 = arith.divf %72, %73 : vector<16x1xf32>
    %75 = vector.broadcast %74 : vector<16x1xf32> to vector<16x32xf32>
    %76 = arith.subf %70, %75 : vector<16x32xf32>
    %77 = arith.mulf %76, %76 : vector<16x32xf32>
    %cst_26 = arith.constant dense<0.000000e+00> : vector<16xf32>
    %78 = vector.multi_reduction <add>, %77, %cst_26 [1] : vector<16x32xf32> to vector<16xf32>
    %79 = vector.shape_cast %78 : vector<16xf32> to vector<16x1xf32>
    %cst_27 = arith.constant 3.200000e+01 : f32
    %80 = vector.broadcast %cst_27 : f32 to vector<16x1xf32>
    %81 = arith.divf %79, %80 : vector<16x1xf32>
    %82 = vector.broadcast %74 : vector<16x1xf32> to vector<16x32xf32>
    %83 = arith.subf %70, %82 : vector<16x32xf32>
    %cst_28 = arith.constant 9.99999974E-6 : f32
    %84 = vector.broadcast %cst_28 : f32 to vector<16x1xf32>
    %85 = arith.addf %81, %84 : vector<16x1xf32>
    %86 = math.rsqrt %85 : vector<16x1xf32>
    %87 = vector.broadcast %86 : vector<16x1xf32> to vector<16x32xf32>
    %88 = arith.mulf %83, %87 : vector<16x32xf32>
    %89 = vector.broadcast %8 : vector<1x32xf32> to vector<16x32xf32>
    %90 = arith.mulf %88, %89 : vector<16x32xf32>
    %91 = vector.broadcast %9 : vector<1x32xf32> to vector<16x32xf32>
    %92 = arith.addf %90, %91 : vector<16x32xf32>
    %cst_29 = arith.constant 0.000000e+00 : f32
    %93 = vector.broadcast %cst_29 : f32 to vector<16x32xf32>
    %94 = arith.maximumf %92, %93 : vector<16x32xf32>
    %c0_30 = arith.constant 0 : index
    %c0_31 = arith.constant 0 : index
    %95 = vector.load %arg8[%c0_30, %c0_31] : memref<16x32xf32, #tpu.memory_space<vmem>>, vector<16x32xf32>
    tpu.vector_store %arg8[%c0_30, %c0_31], %94 {strides = array<i32>} : memref<16x32xf32, #tpu.memory_space<vmem>>, vector<16x32xf32>,
    %c0_32 = arith.constant 0 : index
    %c0_33 = arith.constant 0 : index
    %96 = vector.load %arg9[%c0_32, %c0_33] : memref<16x128xf32, #tpu.memory_space<vmem>>, vector<16x128xf32>
    tpu.vector_store %arg9[%c0_32, %c0_33], %52 {strides = array<i32>} : memref<16x128xf32, #tpu.memory_space<vmem>>, vector<16x128xf32>,
    return
  }
  func.func @transform_0(%arg0: i32) -> (i32, i32) {
    %c0_i32 = arith.constant 0 : i32
    %c0_i32_0 = arith.constant 0 : i32
    return %arg0, %c0_i32 : i32, i32
  }
  func.func @transform_1(%arg0: i32) -> (i32, i32) {
    %c0_i32 = arith.constant 0 : i32
    %c0_i32_0 = arith.constant 0 : i32
    %c0_i32_1 = arith.constant 0 : i32
    return %c0_i32, %c0_i32_0 : i32, i32
  }
  func.func @transform_2(%arg0: i32) -> (i32, i32) {
    %c0_i32 = arith.constant 0 : i32
    %c0_i32_0 = arith.constant 0 : i32
    %c0_i32_1 = arith.constant 0 : i32
    return %c0_i32, %c0_i32_0 : i32, i32
  }
  func.func @transform_3(%arg0: i32) -> (i32, i32) {
    %c0_i32 = arith.constant 0 : i32
    %c0_i32_0 = arith.constant 0 : i32
    %c0_i32_1 = arith.constant 0 : i32
    return %c0_i32, %c0_i32_0 : i32, i32
  }
  func.func @transform_4(%arg0: i32) -> (i32, i32) {
    %c0_i32 = arith.constant 0 : i32
    %c0_i32_0 = arith.constant 0 : i32
    %c0_i32_1 = arith.constant 0 : i32
    return %c0_i32, %c0_i32_0 : i32, i32
  }
  func.func @transform_5(%arg0: i32) -> (i32, i32) {
    %c0_i32 = arith.constant 0 : i32
    %c0_i32_0 = arith.constant 0 : i32
    %c0_i32_1 = arith.constant 0 : i32
    return %c0_i32, %c0_i32_0 : i32, i32
  }
  func.func @transform_6(%arg0: i32) -> (i32, i32) {
    %c0_i32 = arith.constant 0 : i32
    %c0_i32_0 = arith.constant 0 : i32
    %c0_i32_1 = arith.constant 0 : i32
    return %c0_i32, %c0_i32_0 : i32, i32
  }
  func.func @transform_7(%arg0: i32) -> (i32, i32) {
    %c0_i32 = arith.constant 0 : i32
    %c0_i32_0 = arith.constant 0 : i32
    return %arg0, %c0_i32 : i32, i32
  }
  func.func @transform_8(%arg0: i32) -> (i32, i32) {
    %c0_i32 = arith.constant 0 : i32
    %c0_i32_0 = arith.constant 0 : i32
    return %arg0, %c0_i32 : i32, i32
  }
}

</mosaic_0001>

<bundles_post_ra>
// kernel: tpu_custom_call.1
= control target key start
LH: loop header
LB: loop body
LE: loop exit
PB: predicated region body
PF: predicated region fallthrough
CT: control target
= control target key end

     0   :  { %14 = vsyncpa [#allocation3], 0  ;;  %s1028_s0 = inlined_call_operand.vmem [shape: f32[16,128], index: 0, kind: input, shape index: {}]   ;;  %s1029_s1 = inlined_call_operand.vmem [shape: f32[128,96], index: 1, kind: input, shape index: {}]   ;;  %s1030_s2 = inlined_call_operand.vmem [shape: f32[96,32], index: 2, kind: input, shape index: {}]   ;;  %s1031_s3 = inlined_call_operand.vmem [shape: f32[8,32], index: 3, kind: input, shape index: {}]   ;;  %s1032_s4 = inlined_call_operand.vmem [shape: f32[32,128], index: 4, kind: input, shape index: {}]   ;;  %s1033_s5 = inlined_call_operand.vmem [shape: f32[1,128], index: 5, kind: input, shape index: {}]   ;;  %s1034_s6 = inlined_call_operand.vmem [shape: f32[32,32], index: 6, kind: input, shape index: {}]   ;;  %s1035_s7 = inlined_call_operand.hbm [shape: f32[16,32], index: 7, kind: output, shape index: {0}]   ;;  %s1036_s8 = inlined_call_operand.hbm [shape: f32[16,128], index: 8, kind: output, shape index: {1}]  }
   0x1   :  { %v47_v0 = vld [vmem:[%s1029_s1 + $0x78] sm:$0xff]  ;;  %v46_v1 = vld [vmem:[%s1029_s1 + $0x70] sm:$0xff]  ;;  %v45_v2 = vld [vmem:[%s1029_s1 + $0x68] sm:$0xff] }
   0x2   :  { %642 = vmatprep.subr.mxu0 %v47_v0  ;;  %v44_v3 = vld [vmem:[%s1029_s1 + $0x60] sm:$0xff]  ;;  %v43_v5 = vld [vmem:[%s1029_s1 + $0x58] sm:$0xff]  ;;  %v134_v7 = vld [vmem:[%s1030_s2 + $0x50] sm:$0xff] }
   0x3   :  { %643 = vmatpush3.msra.mxu0 %v47_v0  ;;  %v30_v4 = vld [vmem:[%s1028_s0] sm:$0xff]  ;;  %v135_v6 = vld [vmem:[%s1030_s2 + $0x58] sm:$0xff]  ;;  %v42_v8 = vld [vmem:[%s1029_s1 + $0x50] sm:$0xff] }
   0x4   :  { %644 = vmatprep.subr.mxu0 %v46_v1  ;;  %674 = vmatprep.mubr.f32.mxu0 %v30_v4  ;;  %v133_v9 = vld [vmem:[%s1030_s2 + $0x48] sm:$0xff] }
   0x5   :  { %645 = vmatpush3.msra.mxu0 %v46_v1  ;;  %677 = vmatprep.subr.mxu1 %v135_v6 }
   0x6   :  { %646 = vmatprep.subr.mxu0 %v45_v2  ;;  %678 = vmatpush3.msra.mxu1 %v135_v6 }
   0x7   :  { %647 = vmatpush3.msra.mxu0 %v45_v2  ;;  %679 = vmatprep.subr.mxu1 %v134_v7 }
   0x8   :  { %648 = vmatprep.subr.mxu0 %v44_v3 }
   0x9   :  { %649 = vmatpush3.msra.mxu0 %v44_v3 }
   0xa   :  { %650 = vmatprep.subr.mxu0 %v43_v5 }
   0xb   :  { %15 = vsyncpa [#allocation5], 0  ;;  %651 = vmatpush3.msra.mxu0 %v43_v5  ;;  %v41_v10 = vld [vmem:[%s1029_s1 + $0x48] sm:$0xff]  ;;  %680 = vmatpush3.msra.mxu1 %v134_v7  ;;  %v132_v11 = vld [vmem:[%s1030_s2 + $0x40] sm:$0xff]  ;;  %vm140_vm0 = vcmask 785408   ;;  %v136_v32 = vlaneseq  ;;  %vm222_vm1 = vcmask 261120  }
   0xc   :  { %652 = vmatprep.subr.mxu0 %v42_v8  ;;  %681 = vmatprep.subr.mxu1 %v133_v9  ;;  %v40_v12 = vld [vmem:[%s1029_s1 + $0x40] sm:$0xff]  ;;  %v131_v13 = vld [vmem:[%s1030_s2 + $0x38] sm:$0xff]  ;;  %v130_v15 = vld [vmem:[%s1030_s2 + $0x30] sm:$0xff]  ;;  %s803_s13 = smov 96   ;;  %s804_s14 = smov 64  }
   0xd   :  { %653 = vmatpush3.msra.mxu0 %v42_v8  ;;  %682 = vmatpush3.msra.mxu1 %v133_v9  ;;  %v39_v14 = vld [vmem:[%s1029_s1 + $0x38] sm:$0xff]  ;;  %v38_v16 = vld [vmem:[%s1029_s1 + $0x30] sm:$0xff]  ;;  %v129_v17 = vld [vmem:[%s1030_s2 + $0x28] sm:$0xff]  ;;  %v950_v33 = vshrl.u32 %v136_v32, 7 }
   0xe   :  { %654 = vmatprep.subr.mxu0 %v41_v10  ;;  %683 = vmatprep.subr.mxu1 %v132_v11  ;;  %v37_v18 = vld [vmem:[%s1029_s1 + $0x28] sm:$0xff]  ;;  %v128_v19 = vld [vmem:[%s1030_s2 + $0x20] sm:$0xff]  ;;  %v127_v21 = vld [vmem:[%s1030_s2 + $0x18] sm:$0xff] }
   0xf   :  { %655 = vmatpush3.msra.mxu0 %v41_v10  ;;  %684 = vmatpush3.msra.mxu1 %v132_v11  ;;  %v36_v20 = vld [vmem:[%s1029_s1 + $0x20] sm:$0xff]  ;;  %v35_v22 = vld [vmem:[%s1029_s1 + $0x18] sm:$0xff]  ;;  %v126_v23 = vld [vmem:[%s1030_s2 + $0x10] sm:$0xff]  ;;  %v138_v34 = vsub.s32 0, %v950_v33  ;;  %v252_v63 = vsub.s32 1, %v950_v33  ;;  %v258_v0 = vsub.s32 2, %v950_v33 }
  0x10   :  { %656 = vmatprep.subr.mxu0 %v40_v12  ;;  %685 = vmatprep.subr.mxu1 %v131_v13  ;;  %v34_v24 = vld [vmem:[%s1029_s1 + $0x10] sm:$0xff]  ;;  %v33_v25 = vld [vmem:[%s1029_s1 + $0x8] sm:$0xff]  ;;  %v32_v26 = vld [vmem:[%s1029_s1] sm:$0xff] }
  0x11   :  { %657 = vmatpush3.msra.mxu0 %v40_v12  ;;  %686 = vmatpush3.msra.mxu1 %v131_v13  ;;  %v31_v27 = vld [vmem:[%s1028_s0 + $0x8] sm:$0xff]  ;;  %v124_v29 = vld [vmem:[%s1030_s2] sm:$0xff]  ;;  %v267_v53 = vld [vmem:[%s1032_s4 + $0x18] sm:$0xff] }
  0x12   :  { %658 = vmatprep.subr.mxu0 %v39_v14  ;;  %687 = vmatprep.subr.mxu1 %v130_v15  ;;  %v125_v28 = vld [vmem:[%s1030_s2 + $0x8] sm:$0xff]  ;;  %v956_v35 = vld [vmem:[%s1031_s3] sm:$0xff]  ;;  %v266_v54 = vld [vmem:[%s1032_s4 + $0x10] sm:$0xff] }
  0x13   :  { %659 = vmatpush3.msra.mxu0 %v39_v14  ;;  %688 = vmatpush3.msra.mxu1 %v130_v15  ;;  %v139_v37 = vrot.slane %v956_v35, %v138_v34  ;;  %v265_v55 = vld [vmem:[%s1032_s4 + $0x8] sm:$0xff]  ;;  %v264_v56 = vld [vmem:[%s1032_s4] sm:$0xff]  ;;  %v253_v1 = vrot.slane %v956_v35, %v252_v63  ;;  %v259_v4 = vrot.slane %v956_v35, %v258_v0  ;;  %v432_v63 = vsub.s32 3, %v950_v33 }
  0x14   :  { %660 = vmatprep.subr.mxu0 %v38_v16  ;;  %689 = vmatprep.subr.mxu1 %v129_v17  ;;  %v593_v13 = vld [vmem:[%s1033_s5] ss:$0 sm:$0xff] }
  0x15   :  { %661 = vmatpush3.msra.mxu0 %v38_v16  ;;  %690 = vmatpush3.msra.mxu1 %v129_v17  ;;  %v433_v0 = vrot.slane %v956_v35, %v432_v63 }
  0x16   :  { %662 = vmatprep.subr.mxu0 %v37_v18  ;;  %691 = vmatprep.subr.mxu1 %v128_v19 }
  0x17   :  { %663 = vmatpush3.msra.mxu0 %v37_v18  ;;  %692 = vmatpush3.msra.mxu1 %v128_v19 }
  0x18   :  { %664 = vmatprep.subr.mxu0 %v36_v20  ;;  %693 = vmatprep.subr.mxu1 %v127_v21 }
  0x19   :  { %665 = vmatpush3.msra.mxu0 %v36_v20  ;;  %694 = vmatpush3.msra.mxu1 %v127_v21 }
  0x1a   :  { %666 = vmatprep.subr.mxu0 %v35_v22  ;;  %695 = vmatprep.subr.mxu1 %v126_v23 }
  0x1b   :  { %667 = vmatpush3.msra.mxu0 %v35_v22  ;;  %696 = vmatpush3.msra.mxu1 %v126_v23 }
  0x1c   :  { %668 = vmatprep.subr.mxu0 %v34_v24  ;;  %697 = vmatprep.subr.mxu1 %v125_v28 }
  0x1d   :  { %669 = vmatpush3.msra.mxu0 %v34_v24  ;;  %698 = vmatpush3.msra.mxu1 %v125_v28 }
  0x1e   :  { %670 = vmatprep.subr.mxu0 %v33_v25  ;;  %699 = vmatprep.subr.mxu1 %v124_v29 }
  0x1f   :  { %671 = vmatpush3.msra.mxu0 %v33_v25  ;;  %700 = vmatpush3.msra.mxu1 %v124_v29 }
  0x20   :  { %672 = vmatprep.subr.mxu0 %v32_v26  ;;  %704 = vmatprep.subr.mxu1 %v267_v53 }
  0x21   :  { %673 = vmatpush3.msra.mxu0 %v32_v26  ;;  %v800_v26 = vmov 1  }
  0x22   :  { %675 = vmatmul.mubr.f32.vlgmr.msra.gmra.mxu0 %v31_v27  ;;  %736 = vset.pattern.permute.xlu1 %v800_v26 }
  0x23   :  { %735 = vset.pattern.permute.xlu0 %v800_v26 }
  0xe2   :  { %v944_v30 = vpop.f32.mrf.mxu0 }
  0xe4   :  { %v946_v31 = vpop.f32.mrf.mxu0 }
  0xe5   :  { %701 = vmatprep.mubr.msk.f32.mxu1 %vm140_vm0, %v946_v31 }
  0xe6   :  { %702 = vmatmul.mubr.msk.f32.vlgmr.msra.gmra.mxu1 %vm140_vm0, %v944_v30 }
  0xe7   :  { %705 = vmatpush3.msra.mxu1 %v267_v53 }
  0xe8   :  { %706 = vmatprep.subr.mxu1 %v266_v54 }
  0xe9   :  { %707 = vmatpush3.msra.mxu1 %v266_v54 }
  0xea   :  { %708 = vmatprep.subr.mxu1 %v265_v55 }
  0xeb   :  { %709 = vmatpush3.msra.mxu1 %v265_v55 }
  0xec   :  { %710 = vmatprep.subr.mxu1 %v264_v56 }
  0xed   :  { %711 = vmatpush3.msra.mxu1 %v264_v56 }
 0x1a6   :  { %v703_v36 = vpop.f32.mrf.mxu1 }
 0x1a7   :  { %v219_v40 = vadd.f32 %v703_v36, %v139_v37 }
 0x1a8   :  { %v213_v38 = vpop.f32.mrf.mxu1 }
 0x1a9   :  { %v214_v39 = vadd.f32 %v213_v38, %v139_v37  ;;  %v226_v42 = vsel %vm222_vm1, %v219_v40, 0.0  ;;  %v801_v37 = vmov 2   ;;  %v802_v38 = vmov 0  }
 0x1ab   :  { %v223_v41 = vsel %vm222_vm1, %v214_v39, 0.0 }
 0x1ac   :  { %224 = vadd.xlane.f32.xlu0 %v223_v41  ;;  %v427_v41 = vld [vmem:[%s1034_s6 + $0x8] sm:$0xff] }
 0x1b0   :  { %227 = vadd.xlane.f32.xlu0 %v226_v42  ;;  %v426_v42 = vld [vmem:[%s1034_s6] sm:$0xff] }
 0x235   :  { %v225_v43 = vpop.xlane.xlu0 %224 }
 0x236   :  { %v230_v44 = vmul.f32 0.03125, %v225_v43 }
 0x238   :  { %v232_v45 = vsub.f32 %v214_v39, %v230_v44  ;;  %v429_v39 = vld [vmem:[%s1034_s6 + $0x18] sm:$0xff] }
 0x239   :  { %v228_v46 = vpop.xlane.xlu0 %227  ;;  %715 = vmatprep.subr.mxu0 %v429_v39 }
 0x23a   :  { %v231_v47 = vmul.f32 0.03125, %v228_v46  ;;  %v234_v48 = vmul.f32 %v232_v45, %v232_v45  ;;  %716 = vmatpush3.msra.mxu0 %v429_v39 }
 0x23c   :  { %v233_v49 = vsub.f32 %v219_v40, %v231_v47  ;;  %v236_v50 = vsel %vm222_vm1, %v234_v48, 0.0  ;;  %v428_v40 = vld [vmem:[%s1034_s6 + $0x10] sm:$0xff]  ;;  %s805_s6 = smov [#allocation4]  }
 0x23d   :  { %237 = vadd.xlane.f32.xlu1 %v236_v50  ;;  %717 = vmatprep.subr.mxu0 %v428_v40  ;;  %s576_s15 = sshll.u32 %s805_s6, 4  ;;  %s577_s15 = int_to_ptr.vmem [resolvable:$true] %s576_s15 }
 0x23e   :  { %v235_v51 = vmul.f32 %v233_v49, %v233_v49  ;;  %718 = vmatpush3.msra.mxu0 %v428_v40  ;;  %s756_s16 = scalar_lea.vmem %s577_s15, 256  ;;  %p761_p1 = scmp.lt.s32.totalorder %s577_s15, %s577_s15 }
 0x23f   :  { %719 = vmatprep.subr.mxu0 %v427_v41  ;;  %p757_p0 = scmp.ne.s32.totalorder %s577_s15, %s756_s16  ;;  %p762_p2 = scmp.lt.s32.totalorder %s756_s16, %s756_s16 }
 0x240   :  { %v239_v52 = vsel %vm222_vm1, %v235_v51, 0.0  ;;  %720 = vmatpush3.msra.mxu0 %v427_v41 }
 0x241   :  { %240 = vadd.xlane.f32.xlu1 %v239_v52  ;;  %721 = vmatprep.subr.mxu0 %v426_v42  ;;  %p763_p3 = por %p762_p2, %p761_p1 }
 0x242   :  { %722 = vmatpush3.msra.mxu0 %v426_v42 }
 0x243   :  { %p764_p4 = pnand %p763_p3, %p757_p0 }
 0x2c6   :  { %v238_v57 = vpop.xlane.xlu1 %237 }
 0x2c7   :  { %v242_v58 = vmul.f32 0.03125, %v238_v57 }
 0x2c9   :  { %v244_v59 = vadd.f32 1e-05, %v242_v58 }
 0x2ca   :  { %v241_v60 = vpop.xlane.xlu1 %240 }
 0x2cb   :  { %740 = vrsqrt.f32 %v244_v59  ;;  %v243_v61 = vmul.f32 0.03125, %v241_v60 }
 0x2cd   :  { %v245_v62 = vadd.f32 1e-05, %v243_v61 }
 0x2cf   :  { %742 = vrsqrt.f32 %v245_v62 }
 0x2d8   :  { %v741_v2 = vpop.eup %740 }
 0x2d9   :  { %v248_v3 = vmul.f32 %v741_v2, %v232_v45 }
 0x2db   :  { %v254_v5 = vmul.f32 %v253_v1, %v248_v3 }
 0x2dc   :  { %v743_v6 = vpop.eup %742 }
 0x2dd   :  { %v249_v7 = vmul.f32 %v743_v6, %v233_v49  ;;  %v260_v8 = vadd.f32 %v259_v4, %v254_v5 }
 0x2df   :  { %v255_v9 = vmul.f32 %v253_v1, %v249_v7  ;;  %v262_v10 = vmax.f32 %v260_v8, 0.0 }
 0x2e1   :  { %v261_v11 = vadd.f32 %v259_v4, %v255_v9  ;;  %712 = vmatprep.mubr.msk.f32.mxu1 %vm222_vm1, %v262_v10 }
 0x2e3   :  { %v263_v12 = vmax.f32 %v261_v11, 0.0 }
 0x2e5   :  { %713 = vmatmul.mubr.msk.f32.vlgmr.msra.gmra.mxu1 %vm222_vm1, %v263_v12 }
 0x3a5   :  { %v714_v14 = vpop.f32.mrf.mxu1 }
 0x3a6   :  { %v353_v15 = vadd.f32 %v714_v14, %v593_v13 }
 0x3a7   :  { %v347_v16 = vpop.f32.mrf.mxu1 }
 0x3a8   :  { %v348_v17 = vadd.f32 %v593_v13, %v347_v16  ;;  %358 = vmax.xlane.f32.xlu1 %v353_v15 }
 0x3aa   :  { %356 = vmax.xlane.f32.xlu0 %v348_v17 }
 0x431   :  { %v359_v18 = vpop.xlane.xlu1 %358 }
 0x432   :  { %v361_v19 = vsub.f32 %v353_v15, %v359_v18 }
 0x433   :  { %v357_v20 = vpop.xlane.xlu0 %356 }
 0x434   :  { %v364_v21 = vmul.f32 1.442695, %v361_v19  ;;  %v360_v22 = vsub.f32 %v348_v17, %v357_v20 }
 0x436   :  { %744 = vpow2.f32 %v364_v21  ;;  %v362_v23 = vmul.f32 1.442695, %v360_v22 }
 0x438   :  { %746 = vpow2.f32 %v362_v23 }
 0x443   :  { %v745_v24 = vpop.eup %744 }
 0x444   :  { %368 = vadd.xlane.f32.xlu1 %v745_v24 }
 0x445   :  { %v747_v25 = vpop.eup %746 }
 0x446   :  { %366 = vadd.xlane.f32.xlu0 %v747_v25 }
 0x4cd   :  { %v369_v27 = vpop.xlane.xlu1 %368 }
 0x4ce   :  { %748 = vrcp.f32 %v369_v27 }
 0x4cf   :  { %v367_v28 = vpop.xlane.xlu0 %366 }
 0x4d0   :  { %750 = vrcp.f32 %v367_v28 }
 0x4db   :  { %v749_v29 = vpop.eup %748 }
 0x4dc   :  { %v373_v32 = vmul.f32 %v749_v29, %v745_v24 }
 0x4dd   :  { %v751_v34 = vpop.eup %750 }
 0x4de   :  { %391 = vperm.xlu1 %736, %v373_v32   ;;  %558 = vst [vmem:[#allocation4 + $0x8] sm:$0xff] %v373_v32  ;;  %v372_v36 = vmul.f32 %v751_v34, %v747_v25 }
 0x4e0   :  { %387 = vperm.xlu0 %735, %v372_v36   ;;  %557 = vst [vmem:[#allocation4] sm:$0xff] %v372_v36 }
 0x4e2   :  { %737 = vset.pattern.permute.xlu1 %v801_v37 }
 0x4e3   :  { %407 = vperm.xlu1 %737, %v372_v36  }
 0x4e4   :  { %739 = vset.pattern.permute.xlu0 %v801_v37 }
 0x4e7   :  { %411 = vperm.xlu1 %737, %v373_v32  }
 0x4eb   :  { %738 = vset.pattern.permute.xlu1 %v802_v38 }
 0x4ec   :  { %381 = vperm.xlu1 %738, %v373_v32  }
 0x4f0   :  { %376 = vperm.xlu1 %738, %v372_v36  }
 0x559   :  { %v392_v43 = vpop.permute.xlu1 %391 }
 0x55a   :  { %v395_v44 = vmul.f32 %v944_v30, %v392_v43 }
 0x55b   :  { %v388_v45 = vpop.permute.xlu0 %387 }
 0x55c   :  { %400 = vrot.lane.b32.xlu1 %v395_v44, %s803_s13  ;;  %v394_v46 = vmul.f32 %v388_v45, %v946_v31 }
 0x55e   :  { %v408_v47 = vpop.permute.xlu1 %407 }
 0x55f   :  { %v414_v48 = vmul.f32 %v408_v47, %v946_v31 }
 0x560   :  { %398 = vrot.lane.b32.xlu1 %v394_v46, %s803_s13 }
 0x562   :  { %v412_v49 = vpop.permute.xlu1 %411 }
 0x563   :  { %v415_v50 = vmul.f32 %v944_v30, %v412_v49 }
 0x564   :  { %418 = vrot.lane.b32.xlu1 %v414_v48, %s804_s14 }
 0x565   :  { %420 = vrot.lane.b32.xlu0 %v415_v50, %s804_s14 }
 0x567   :  { %v382_v51 = vpop.permute.xlu1 %381 }
 0x568   :  { %v385_v56 = vmul.f32 %v944_v30, %v382_v51 }
 0x56b   :  { %v377_v52 = vpop.permute.xlu1 %376 }
 0x56c   :  { %v384_v55 = vmul.f32 %v377_v52, %v946_v31 }
 0x5ce   :  { %v401_v53 = vpop.permute.xlu1 %400 }
 0x5cf   :  { %v405_v58 = vadd.f32 %v401_v53, %v385_v56 }
 0x5d2   :  { %v399_v54 = vpop.permute.xlu1 %398 }
 0x5d3   :  { %v404_v57 = vadd.f32 %v399_v54, %v384_v55 }
 0x5d6   :  { %v419_v59 = vpop.permute.xlu1 %418 }
 0x5d7   :  { %v424_v60 = vadd.f32 %v419_v59, %v404_v57  ;;  %v421_v61 = vpop.permute.xlu0 %420 }
 0x5d8   :  { %v425_v62 = vadd.f32 %v421_v61, %v405_v58 }
 0x5d9   :  { %723 = vmatprep.mubr.msk.f32.mxu0 %vm222_vm1, %v424_v60 }
 0x5da   :  { %724 = vmatmul.mubr.msk.f32.vlgmr.msra.gmra.mxu0 %vm222_vm1, %v425_v62 }
 0x69a   :  { %v725_v1 = vpop.f32.mrf.mxu0 }
 0x69b   :  { %v512_v2 = vadd.f32 %v725_v1, %v433_v0 }
 0x69c   :  { %v506_v3 = vpop.f32.mrf.mxu0 }
 0x69d   :  { %v507_v31 = vadd.f32 %v506_v3, %v433_v0  ;;  %v518_v30 = vsel %vm222_vm1, %v512_v2, 0.0 }
 0x69e   :  { %519 = vadd.xlane.f32.xlu0 %v518_v30 }
 0x69f   :  { %v515_v4 = vsel %vm222_vm1, %v507_v31, 0.0 }
 0x6a0   :  { %516 = vadd.xlane.f32.xlu1 %v515_v4 }
 0x727   :  { %v520_v5 = vpop.xlane.xlu0 %519 }
 0x728   :  { %v522_v6 = vmul.f32 0.03125, %v520_v5 }
 0x729   :  { %v517_v7 = vpop.xlane.xlu1 %516 }
 0x72a   :  { %v524_v8 = vsub.f32 %v512_v2, %v522_v6  ;;  %v521_v9 = vmul.f32 0.03125, %v517_v7 }
 0x72c   :  { %v523_v10 = vsub.f32 %v507_v31, %v521_v9  ;;  %v526_v11 = vmul.f32 %v524_v8, %v524_v8 }
 0x72e   :  { %v530_v12 = vsel %vm222_vm1, %v526_v11, 0.0  ;;  %v525_v13 = vmul.f32 %v523_v10, %v523_v10 }
 0x72f   :  { %531 = vadd.xlane.f32.xlu1 %v530_v12 }
 0x730   :  { %v527_v14 = vsel %vm222_vm1, %v525_v13, 0.0 }
 0x731   :  { %528 = vadd.xlane.f32.xlu0 %v527_v14 }
 0x732   :  { %767 = shalt.err (!%p764_p4)
}
 0x733   :  { %s806_s17 = smov 128   ;;  %s807_s18 = smov 8   ;;  %v543_v21 = vsub.s32 4, %v950_v33  ;;  %v549_v22 = vsub.s32 5, %v950_v33 }
 0x734   :  { %582 = dma.vmem_to_hbm [thread:$0]  %s577_s15, 256, %s1036_s8, [#allocation5], %s806_s17, %s806_s17, %s807_s18  }
 0x735   :  { %v544_v23 = vrot.slane %v956_v35, %v543_v21  ;;  %v550_v26 = vrot.slane %v956_v35, %v549_v22  ;;  %s808_s8 = smov [#allocation2]  }
 0x736   :  { %s564_s0 = sshll.u32 %s808_s8, 4  ;;  %s565_s0 = int_to_ptr.vmem [resolvable:$true] %s564_s0 }
 0x737   :  { %s776_s1 = scalar_lea.vmem %s565_s0, 256  ;;  %p781_p6 = scmp.lt.s32.totalorder %s565_s0, %s565_s0 }
 0x738   :  { %p777_p5 = scmp.ne.s32.totalorder %s565_s0, %s776_s1  ;;  %p782_p7 = scmp.lt.s32.totalorder %s776_s1, %s776_s1 }
 0x73a   :  { %p783_p8 = por %p782_p7, %p781_p6 }
 0x73c   :  { %p784_p9 = pnand %p783_p8, %p777_p5 }
 0x7b8   :  { %v532_v15 = vpop.xlane.xlu1 %531 }
 0x7b9   :  { %v534_v16 = vmul.f32 0.03125, %v532_v15 }
 0x7ba   :  { %v529_v17 = vpop.xlane.xlu0 %528 }
 0x7bb   :  { %v536_v18 = vadd.f32 1e-05, %v534_v16  ;;  %v533_v19 = vmul.f32 0.03125, %v529_v17 }
 0x7bd   :  { %752 = vrsqrt.f32 %v536_v18  ;;  %v535_v20 = vadd.f32 1e-05, %v533_v19 }
 0x7bf   :  { %754 = vrsqrt.f32 %v535_v20 }
 0x7ca   :  { %v753_v24 = vpop.eup %752 }
 0x7cb   :  { %v540_v25 = vmul.f32 %v753_v24, %v524_v8 }
 0x7cc   :  { %v755_v27 = vpop.eup %754 }
 0x7cd   :  { %v539_v28 = vmul.f32 %v755_v27, %v523_v10  ;;  %v546_v29 = vmul.f32 %v544_v23, %v540_v25 }
 0x7cf   :  { %v545_v32 = vmul.f32 %v544_v23, %v539_v28  ;;  %v552_v34 = vadd.f32 %v550_v26, %v546_v29 }
 0x7d1   :  { %v551_v36 = vadd.f32 %v550_v26, %v545_v32  ;;  %v554_v37 = vmax.f32 %v552_v34, 0.0 }
 0x7d3   :  { %v553_v38 = vmax.f32 %v551_v36, 0.0  ;;  %556 = vst.msk [vmem:[#allocation2 + $0x8] sm:$0xff] %vm222_vm1, %v554_v37 }
 0x7d5   :  { %555 = vst.msk [vmem:[#allocation2] sm:$0xff] %vm222_vm1, %v553_v38 }
 0x7d6   :  { %787 = shalt.err (!%p784_p9)
}
 0x7d7   :  { %570 = dma.vmem_to_hbm [thread:$0]  %s565_s0, 256, %s1035_s7, [#allocation3], %s806_s17, %s806_s17, %s807_s18  }
 0x7d8   :  { %796 = dma.done.wait [#allocation3], 256  }
 0x7d9   :  { %797 = vsyncadd [#allocation3], 4294967040 }
 0x7da   :  { %798 = dma.done.wait [#allocation5], 256  }
 0x7db   :  { %799 = vsyncadd [#allocation5], 4294967040 }
 0x7dc   :  { %589 = vsyncpa [#allocation3], 1 }
 0x7dd   :  { %590 = vsyncpa [#allocation5], 1 }

</bundles_post_ra>
